<compile_context>
chip_gen: v7x
topology: tpu7x:2x2x1
jax: 0.10.0
libtpu: 0.0.40
codegen_flags: <defaults>
</compile_context>

<pallas_src>
import jax
import jax.numpy as jnp
from jax import lax
from jax.experimental import pallas as pl
from jax.experimental.pallas import tpu as pltpu

_LANE = 128


def _rup(n, m=_LANE):
    return -(-n // m) * m


def _make_neumf_kernel(num_hidden, E, PL):
    """num_hidden = len(mlp_dim) - 1 (>=1). E = packed embedding width.
    PL = padded widths of MLP layer outputs (len == num_hidden)."""
    n_rest = num_hidden - 1
    R_BU, R_BV = 0, 1
    R_REST = 2                       # rows 2 .. 2 + n_rest - 1
    R_PWMF = 2 + n_rest
    R_PWMLP = R_PWMF + 1
    R_PB = R_PWMLP + 1
    W_MLP_HEAD = E if num_hidden == 1 else PL[-1]

    def kernel(*refs):
        user_ref, item_ref, wu_ref, wv_ref = refs[0:4]
        rest_w = refs[4:4 + n_rest]
        bias_ref = refs[4 + n_rest]
        out_ref = refs[5 + n_rest]

        f32 = jnp.float32
        bf16 = jnp.bfloat16

        def brow(r, w):  # static (1, w) f32 bias/head row view
            return bias_ref[r:r + 1, :w]

        # Cast activations to bf16 in-kernel (inputs arrive in original dtype).
        u = user_ref[...].astype(bf16)   # (TB, user_dim)
        v = item_ref[...].astype(bf16)   # (TB, item_dim)

        # Packed embedding stage: one dot per input (GMF + folded-MLP lanes).
        a_u = jnp.dot(u, wu_ref[...], preferred_element_type=f32) + brow(R_BU, E)
        a_v = jnp.dot(v, wv_ref[...], preferred_element_type=f32) + brow(R_BV, E)

        # ---- GMF head contribution first (frees the (TB,E) product tile) ----
        mf_full = (a_u * a_v).astype(bf16)            # junk in MLP lanes
        pw_mf = brow(R_PWMF, E).astype(bf16)          # zeros in non-GMF lanes
        gmf_logit = lax.dot_general(                  # (1, TB) on the MXU
            pw_mf, mf_full, (((1,), (1,)), ((), ())),
            preferred_element_type=f32)

        # ---- MLP chain (first layer already folded into the embedding) ----
        h = jnp.maximum(a_u + a_v, 0.0)               # junk in GMF lanes
        for k in range(n_rest):
            w_ref = rest_w[k]                         # zero rows mask junk lanes
            h = jnp.dot(h.astype(bf16), w_ref[...],
                        preferred_element_type=f32) + brow(R_REST + k, PL[k + 1])
            h = jnp.maximum(h, 0.0)

        pw_mlp = brow(R_PWMLP, W_MLP_HEAD).astype(bf16)
        mlp_logit = lax.dot_general(                  # (1, TB)
            pw_mlp, h.astype(bf16), (((1,), (1,)), ((), ())),
            preferred_element_type=f32)

        logit = gmf_logit + mlp_logit + bias_ref[R_PB:R_PB + 1, 0:1]
        out_ref[...] = jax.nn.sigmoid(logit)          # lane-dense (1, TB)

    return kernel


def neumf_pallas(user, item, params, mlp_dim, *, block_batch=1024,
                 dot_dtype=jnp.bfloat16):
    """Fused NeuMF forward, batch tiled over a parallel grid axis."""
    B, user_dim = user.shape
    _, item_dim = item.shape
    mf_dim = params["mf_uw"].shape[1]
    half = mlp_dim[0] // 2
    num_hidden = len(params["mlp_w"])
    n_rest = num_hidden - 1
    f32 = jnp.float32

    d1 = mlp_dim[1]
    OFF = mf_dim                         # MLP lanes start right after GMF lanes
    E = _rup(mf_dim + d1)                # packed embedding / first-MLP width
    PL = [_rup(d) for d in mlp_dim[1:]]  # padded MLP layer output widths
    W_MLP_HEAD = E if num_hidden == 1 else PL[-1]

    # ---- batch tiling: multiple of 128, >= 2 grid steps when possible ------
    Bp128 = _rup(B)
    TB = min(block_batch, Bp128)
    if Bp128 >= 2 * _LANE:               # keep both v7x TensorCores busy
        TB = min(TB, max(_LANE, (Bp128 // 2) // _LANE * _LANE))
    TB = max(_LANE, (TB // _LANE) * _LANE)
    num_tiles = pl.cdiv(B, TB)
    Bp = num_tiles * TB

    # Pad batch rows only if needed; no wrapper-side dtype cast.
    if Bp != B:
        user_in = jnp.pad(user, ((0, Bp - B), (0, 0)))
        item_in = jnp.pad(item, ((0, Bp - B), (0, 0)))
    else:
        user_in, item_in = user, item

    # ---- fold MLP embedding Linear into the first MLP Linear (f32) ---------
    W0 = params["mlp_w"][0].astype(f32)            # (mlp_dim[0], d1)
    W0u, W0i = W0[:half], W0[half:]
    b0 = params["mlp_b"][0].astype(f32).reshape(-1)
    fold_u = params["mlp_uw"].astype(f32) @ W0u    # (user_dim, d1)
    fold_i = params["mlp_iw"].astype(f32) @ W0i    # (item_dim, d1)
    fold_b = (params["mlp_ub"].astype(f32).reshape(-1) @ W0u
              + params["mlp_ib"].astype(f32).reshape(-1) @ W0i + b0)  # (d1,)

    def place(buf, arr, r0, c0):
        return buf.at[r0:r0 + arr.shape[0], c0:c0 + arr.shape[1]].set(arr)

    # ---- packed embedding weights:  [ GMF | folded MLP ] -------------------
    wu = jnp.zeros((user_dim, E), f32)
    wu = place(wu, params["mf_uw"].astype(f32), 0, 0)
    wu = place(wu, fold_u, 0, OFF)
    wv = jnp.zeros((item_dim, E), f32)
    wv = place(wv, params["mf_iw"].astype(f32), 0, 0)
    wv = place(wv, fold_i, 0, OFF)
    wu = wu.astype(dot_dtype)
    wv = wv.astype(dot_dtype)

    # ---- remaining MLP layer weights (zero-padded; zero rows mask junk) ----
    rest_p = []
    for j in range(n_rest):                       # mlp_w[j+1]: (d_{j+1}, d_{j+2})
        w = params["mlp_w"][j + 1].astype(f32)
        in_pad = E if j == 0 else PL[j]
        row0 = OFF if j == 0 else 0
        buf = jnp.zeros((in_pad, PL[j + 1]), f32)
        buf = place(buf, w, row0, 0)
        rest_p.append(buf.astype(dot_dtype))

    # ---- single packed bias / head-row buffer ------------------------------
    Wp = params["pred_w"].astype(f32).reshape(-1)     # (mf_dim + mlp_dim[-1],)
    pred_b = params["pred_b"].astype(f32).reshape(-1)
    n_rows = 2 + n_rest + 3
    PB = max([E, W_MLP_HEAD] + [PL[j + 1] for j in range(n_rest)])
    R8 = _rup(n_rows, 8)
    bias_pack = jnp.zeros((R8, PB), f32)

    bias_u = (jnp.zeros((E,), f32)
              .at[:mf_dim].set(params["mf_ub"].astype(f32).reshape(-1))
              .at[OFF:OFF + d1].set(fold_b))
    bias_v = (jnp.zeros((E,), f32)
              .at[:mf_dim].set(params["mf_ib"].astype(f32).reshape(-1)))
    bias_pack = bias_pack.at[0, :E].set(bias_u)
    bias_pack = bias_pack.at[1, :E].set(bias_v)
    for j in range(n_rest):
        b = params["mlp_b"][j + 1].astype(f32).reshape(-1)
        bias_pack = bias_pack.at[2 + j, :b.shape[0]].set(b)
    R_PWMF = 2 + n_rest
    bias_pack = bias_pack.at[R_PWMF, :mf_dim].set(Wp[:mf_dim])
    mlp_head_off = OFF if num_hidden == 1 else 0
    bias_pack = bias_pack.at[R_PWMF + 1,
                             mlp_head_off:mlp_head_off + mlp_dim[-1]].set(Wp[mf_dim:])
    bias_pack = bias_pack.at[R_PWMF + 2, 0].set(pred_b[0])

    inputs = [user_in, item_in, wu, wv, *rest_p, bias_pack]

    in_specs = [
        pl.BlockSpec((TB, user_dim), lambda i: (i, 0)),
        pl.BlockSpec((TB, item_dim), lambda i: (i, 0)),
        pl.BlockSpec((user_dim, E), lambda i: (0, 0)),
        pl.BlockSpec((item_dim, E), lambda i: (0, 0)),
    ] + [pl.BlockSpec(w.shape, lambda i: (0, 0)) for w in rest_p] + [
        pl.BlockSpec((R8, PB), lambda i: (0, 0)),
    ]
    out_spec = pl.BlockSpec((1, TB), lambda i: (0, i))   # lane-dense logits

    # ---- cost estimate & VMEM budget ---------------------------------------
    dot_cols = user_dim * E + item_dim * E + E + W_MLP_HEAD
    for j in range(n_rest):
        dot_cols += (E if j == 0 else PL[j]) * PL[j + 1]
    act_itemsize = jnp.dtype(user.dtype).itemsize
    flops = 2 * Bp * dot_cols + 8 * Bp * E
    bytes_accessed = (Bp * (user_dim + item_dim) * act_itemsize + Bp * 4
                      + (wu.size + wv.size + sum(w.size for w in rest_p)) * 2
                      + bias_pack.size * 4)
    cost = pl.CostEstimate(flops=int(flops), transcendentals=int(Bp),
                           bytes_accessed=int(bytes_accessed))

    est_vmem = (2 * TB * (user_dim + item_dim) * act_itemsize       # act buffers
                + 2 * TB * 4                                        # out buffers
                + 2 * 2 * (wu.size + wv.size + sum(w.size for w in rest_p))
                + 2 * 4 * bias_pack.size
                + 8 * TB * max([E] + PL) * 4)                       # intermediates
    vmem_limit = int(min(64 * 2**20, max(16 * 2**20, 2 * est_vmem)))

    kernel = _make_neumf_kernel(num_hidden, E, tuple(PL))

    out = pl.pallas_call(
        kernel,
        grid=(num_tiles,),
        in_specs=in_specs,
        out_specs=out_spec,
        out_shape=jax.ShapeDtypeStruct((1, Bp), jnp.float32),
        compiler_params=pltpu.CompilerParams(
            dimension_semantics=("parallel",),
            vmem_limit_bytes=vmem_limit,
        ),
        cost_estimate=cost,
    )(*inputs)

    return out[0, :B].reshape(B, 1)


# ---------------------------------------------------------------------------
# Deterministic parameter initialization (PyTorch nn.Linear-style uniform).
# Linear weights stored transposed vs. PyTorch: (in_features, out_features).
# ---------------------------------------------------------------------------
def _init_linear(key, fan_in, fan_out):
    k_w, k_b = jax.random.split(key)
    bound = 1.0 / float(fan_in) ** 0.5
    w = jax.random.uniform(k_w, (fan_in, fan_out), jnp.float32, -bound, bound)
    b = jax.random.uniform(k_b, (1, fan_out), jnp.float32, -bound, bound)
    return w, b


def init_neumf_params(key, user_dim, item_dim, mf_dim, mlp_dim):
    keys = jax.random.split(key, 6 + (len(mlp_dim) - 1))
    params = {}
    params["mf_uw"], params["mf_ub"] = _init_linear(keys[0], user_dim, mf_dim)
    params["mf_iw"], params["mf_ib"] = _init_linear(keys[1], item_dim, mf_dim)
    params["mlp_uw"], params["mlp_ub"] = _init_linear(keys[2], user_dim, mlp_dim[0] // 2)
    params["mlp_iw"], params["mlp_ib"] = _init_linear(keys[3], item_dim, mlp_dim[0] // 2)
    params["mlp_w"], params["mlp_b"] = [], []
    for idx in range(len(mlp_dim) - 1):
        w, b = _init_linear(keys[4 + idx], mlp_dim[idx], mlp_dim[idx + 1])
        params["mlp_w"].append(w)
        params["mlp_b"].append(b)
    params["pred_w"], params["pred_b"] = _init_linear(keys[-1], mf_dim + mlp_dim[-1], 1)
    return params


def neumf_reference(user, item, params):
    """Pure-f32 JAX reference mirroring the PyTorch forward exactly."""
    mf_u = user @ params["mf_uw"] + params["mf_ub"]
    mf_i = item @ params["mf_iw"] + params["mf_ib"]
    mf_vec = mf_u * mf_i
    mlp_u = user @ params["mlp_uw"] + params["mlp_ub"]
    mlp_i = item @ params["mlp_iw"] + params["mlp_ib"]
    h = jnp.concatenate([mlp_u, mlp_i], axis=1)
    for w, b in zip(params["mlp_w"], params["mlp_b"]):
        h = jnp.maximum(h @ w + b, 0.0)
    pv = jnp.concatenate([mf_vec, h], axis=1)
    logit = pv @ params["pred_w"] + params["pred_b"]
    return jax.nn.sigmoid(logit)


if __name__ == "__main__":
    # Small, module-consistent shapes; batch chosen to exercise >1 grid step.
    batch = 256
    user_dim, item_dim = 32, 24
    mf_dim = 16
    mlp_dim = [32, 16, 8]   # mlp_dim[0] // 2 = 16 per embedding half

    key = jax.random.PRNGKey(0)
    k_user, k_item, k_params = jax.random.split(key, 3)
    user_context = jax.random.normal(k_user, (batch, user_dim), jnp.float32)
    item_context = jax.random.normal(k_item, (batch, item_dim), jnp.float32)
    params = init_neumf_params(k_params, user_dim, item_dim, mf_dim, mlp_dim)

    out = neumf_pallas(user_context, item_context, params, mlp_dim)
    out = jax.block_until_ready(out)

    ref = neumf_reference(user_context, item_context, params)
    assert out.shape == (batch, 1)
    max_err = float(jnp.max(jnp.abs(out - ref)))
    assert jnp.allclose(out, ref, atol=1e-2, rtol=1e-2), max_err

    print("KERNEL_OK")
</pallas_src>

<mosaic_0001>
module attributes {stable_mosaic.version = 11 : i64} {
  func.func @kernel(%arg0: i32, %arg1: memref<128x32xf32, #tpu.memory_space<vmem>>, %arg2: memref<128x24xf32, #tpu.memory_space<vmem>>, %arg3: memref<32x128xbf16, #tpu.memory_space<vmem>>, %arg4: memref<24x128xbf16, #tpu.memory_space<vmem>>, %arg5: memref<128x128xbf16, #tpu.memory_space<vmem>>, %arg6: memref<8x128xf32, #tpu.memory_space<vmem>>, %arg7: memref<1x128xf32, #tpu.memory_space<vmem>>) attributes {dimension_semantics = [#tpu.dimension_semantics<parallel>], iteration_bounds = array<i64: 2>, scalar_prefetch = 0 : i64, scratch_operands = 0 : i64, tpu.core_type = #tpu.core_type<tc>, window_params = [{transform_indices = @transform_0, window_bounds = array<i64: 128, 32>}, {transform_indices = @transform_1, window_bounds = array<i64: 128, 24>}, {pipeline_mode = #tpu.pipeline_mode<synchronous>, transform_indices = @transform_2, window_bounds = array<i64: 32, 128>}, {pipeline_mode = #tpu.pipeline_mode<synchronous>, transform_indices = @transform_3, window_bounds = array<i64: 24, 128>}, {pipeline_mode = #tpu.pipeline_mode<synchronous>, transform_indices = @transform_4, window_bounds = array<i64: 128, 128>}, {pipeline_mode = #tpu.pipeline_mode<synchronous>, transform_indices = @transform_5, window_bounds = array<i64: 8, 128>}, {transform_indices = @transform_6, window_bounds = array<i64: 1, 128>}]} {
    %c0 = arith.constant 0 : index
    %c0_0 = arith.constant 0 : index
    %0 = vector.load %arg1[%c0, %c0_0] : memref<128x32xf32, #tpu.memory_space<vmem>>, vector<128x32xf32>
    %1 = arith.truncf %0 : vector<128x32xf32> to vector<128x32xbf16>
    %c0_1 = arith.constant 0 : index
    %c0_2 = arith.constant 0 : index
    %2 = vector.load %arg2[%c0_1, %c0_2] : memref<128x24xf32, #tpu.memory_space<vmem>>, vector<128x24xf32>
    %3 = arith.truncf %2 : vector<128x24xf32> to vector<128x24xbf16>
    %c0_3 = arith.constant 0 : index
    %c0_4 = arith.constant 0 : index
    %4 = vector.load %arg3[%c0_3, %c0_4] : memref<32x128xbf16, #tpu.memory_space<vmem>>, vector<32x128xbf16>
    %cst = arith.constant dense<0.000000e+00> : vector<128x128xf32>
    %5 = tpu.matmul %1, %4, %cst {dimension_numbers = #tpu.dot_dimension_numbers<[1], [0], [0], [1], [0, 0, 1, 1], [], []>} : vector<128x32xbf16>, vector<32x128xbf16>, vector<128x128xf32> -> vector<128x128xf32>
    %c0_5 = arith.constant 0 : index
    %c0_6 = arith.constant 0 : index
    %6 = vector.load %arg6[%c0_5, %c0_6] : memref<8x128xf32, #tpu.memory_space<vmem>>, vector<1x128xf32>
    %7 = vector.broadcast %6 : vector<1x128xf32> to vector<128x128xf32>
    %8 = arith.addf %5, %7 : vector<128x128xf32>
    %c0_7 = arith.constant 0 : index
    %c0_8 = arith.constant 0 : index
    %9 = vector.load %arg4[%c0_7, %c0_8] : memref<24x128xbf16, #tpu.memory_space<vmem>>, vector<24x128xbf16>
    %cst_9 = arith.constant dense<0.000000e+00> : vector<128x128xf32>
    %10 = tpu.matmul %3, %9, %cst_9 {dimension_numbers = #tpu.dot_dimension_numbers<[1], [0], [0], [1], [0, 0, 1, 1], [], []>} : vector<128x24xbf16>, vector<24x128xbf16>, vector<128x128xf32> -> vector<128x128xf32>
    %c1 = arith.constant 1 : index
    %c0_10 = arith.constant 0 : index
    %11 = vector.load %arg6[%c1, %c0_10] : memref<8x128xf32, #tpu.memory_space<vmem>>, vector<1x128xf32>
    %12 = vector.broadcast %11 : vector<1x128xf32> to vector<128x128xf32>
    %13 = arith.addf %10, %12 : vector<128x128xf32>
    %14 = arith.mulf %8, %13 : vector<128x128xf32>
    %15 = arith.truncf %14 : vector<128x128xf32> to vector<128x128xbf16>
    %c3 = arith.constant 3 : index
    %c0_11 = arith.constant 0 : index
    %16 = vector.load %arg6[%c3, %c0_11] : memref<8x128xf32, #tpu.memory_space<vmem>>, vector<1x128xf32>
    %17 = arith.truncf %16 : vector<1x128xf32> to vector<1x128xbf16>
    %cst_12 = arith.constant dense<0.000000e+00> : vector<1x128xf32>
    %18 = tpu.matmul %17, %15, %cst_12 {dimension_numbers = #tpu.dot_dimension_numbers<[1], [1], [0], [0], [0, 0, 1, 0], [], []>} : vector<1x128xbf16>, vector<128x128xbf16>, vector<1x128xf32> -> vector<1x128xf32>
    %19 = arith.addf %8, %13 : vector<128x128xf32>
    %cst_13 = arith.constant 0.000000e+00 : f32
    %20 = vector.broadcast %cst_13 : f32 to vector<128x128xf32>
    %21 = arith.maximumf %19, %20 : vector<128x128xf32>
    %22 = arith.truncf %21 : vector<128x128xf32> to vector<128x128xbf16>
    %c0_14 = arith.constant 0 : index
    %c0_15 = arith.constant 0 : index
    %23 = vector.load %arg5[%c0_14, %c0_15] : memref<128x128xbf16, #tpu.memory_space<vmem>>, vector<128x128xbf16>
    %cst_16 = arith.constant dense<0.000000e+00> : vector<128x128xf32>
    %24 = tpu.matmul %22, %23, %cst_16 {dimension_numbers = #tpu.dot_dimension_numbers<[1], [0], [0], [1], [0, 0, 1, 1], [], []>} : vector<128x128xbf16>, vector<128x128xbf16>, vector<128x128xf32> -> vector<128x128xf32>
    %c2 = arith.constant 2 : index
    %c0_17 = arith.constant 0 : index
    %25 = vector.load %arg6[%c2, %c0_17] : memref<8x128xf32, #tpu.memory_space<vmem>>, vector<1x128xf32>
    %26 = vector.broadcast %25 : vector<1x128xf32> to vector<128x128xf32>
    %27 = arith.addf %24, %26 : vector<128x128xf32>
    %cst_18 = arith.constant 0.000000e+00 : f32
    %28 = vector.broadcast %cst_18 : f32 to vector<128x128xf32>
    %29 = arith.maximumf %27, %28 : vector<128x128xf32>
    %c4 = arith.constant 4 : index
    %c0_19 = arith.constant 0 : index
    %30 = vector.load %arg6[%c4, %c0_19] : memref<8x128xf32, #tpu.memory_space<vmem>>, vector<1x128xf32>
    %31 = arith.truncf %30 : vector<1x128xf32> to vector<1x128xbf16>
    %32 = arith.truncf %29 : vector<128x128xf32> to vector<128x128xbf16>
    %cst_20 = arith.constant dense<0.000000e+00> : vector<1x128xf32>
    %33 = tpu.matmul %31, %32, %cst_20 {dimension_numbers = #tpu.dot_dimension_numbers<[1], [1], [0], [0], [0, 0, 1, 0], [], []>} : vector<1x128xbf16>, vector<128x128xbf16>, vector<1x128xf32> -> vector<1x128xf32>
    %34 = arith.addf %18, %33 : vector<1x128xf32>
    %c5 = arith.constant 5 : index
    %c0_21 = arith.constant 0 : index
    %35 = vector.load %arg6[%c5, %c0_21] : memref<8x128xf32, #tpu.memory_space<vmem>>, vector<1x1xf32>
    %36 = vector.broadcast %35 : vector<1x1xf32> to vector<1x128xf32>
    %37 = arith.addf %34, %36 : vector<1x128xf32>
    %38 = arith.negf %37 : vector<1x128xf32>
    %39 = math.exp %38 : vector<1x128xf32>
    %cst_22 = arith.constant 1.000000e+00 : f32
    %40 = vector.broadcast %cst_22 : f32 to vector<1x128xf32>
    %41 = arith.addf %40, %39 : vector<1x128xf32>
    %42 = arith.divf %40, %41 : vector<1x128xf32>
    %c0_23 = arith.constant 0 : index
    %c0_24 = arith.constant 0 : index
    %43 = vector.load %arg7[%c0_23, %c0_24] : memref<1x128xf32, #tpu.memory_space<vmem>>, vector<1x128xf32>
    tpu.vector_store %arg7[%c0_23, %c0_24], %42 {strides = array<i32>} : memref<1x128xf32, #tpu.memory_space<vmem>>, vector<1x128xf32>,
    return
  }
  func.func @transform_0(%arg0: i32) -> (i32, i32) {
    %c0_i32 = arith.constant 0 : i32
    %c0_i32_0 = arith.constant 0 : i32
    return %arg0, %c0_i32 : i32, i32
  }
  func.func @transform_1(%arg0: i32) -> (i32, i32) {
    %c0_i32 = arith.constant 0 : i32
    %c0_i32_0 = arith.constant 0 : i32
    return %arg0, %c0_i32 : i32, i32
  }
  func.func @transform_2(%arg0: i32) -> (i32, i32) {
    %c0_i32 = arith.constant 0 : i32
    %c0_i32_0 = arith.constant 0 : i32
    %c0_i32_1 = arith.constant 0 : i32
    return %c0_i32, %c0_i32_0 : i32, i32
  }
  func.func @transform_3(%arg0: i32) -> (i32, i32) {
    %c0_i32 = arith.constant 0 : i32
    %c0_i32_0 = arith.constant 0 : i32
    %c0_i32_1 = arith.constant 0 : i32
    return %c0_i32, %c0_i32_0 : i32, i32
  }
  func.func @transform_4(%arg0: i32) -> (i32, i32) {
    %c0_i32 = arith.constant 0 : i32
    %c0_i32_0 = arith.constant 0 : i32
    %c0_i32_1 = arith.constant 0 : i32
    return %c0_i32, %c0_i32_0 : i32, i32
  }
  func.func @transform_5(%arg0: i32) -> (i32, i32) {
    %c0_i32 = arith.constant 0 : i32
    %c0_i32_0 = arith.constant 0 : i32
    %c0_i32_1 = arith.constant 0 : i32
    return %c0_i32, %c0_i32_0 : i32, i32
  }
  func.func @transform_6(%arg0: i32) -> (i32, i32) {
    %c0_i32 = arith.constant 0 : i32
    %c0_i32_0 = arith.constant 0 : i32
    return %c0_i32, %arg0 : i32, i32
  }
}

</mosaic_0001>

<bundles_post_ra>
// kernel: tpu_custom_call.1
= control target key start
LH: loop header
LB: loop body
LE: loop exit
PB: predicated region body
PF: predicated region fallthrough
CT: control target
= control target key end

     0   :  { %11 = vsyncpa [#allocation3], 0  ;;  %s1704_s0 = inlined_call_operand.vmem [shape: f32[256,32], index: 0, kind: input, shape index: {}]   ;;  %s1705_s1 = inlined_call_operand.vmem [shape: f32[256,24], index: 1, kind: input, shape index: {}]   ;;  %s1706_s2 = inlined_call_operand.vmem [shape: bf16[32,128], index: 2, kind: input, shape index: {}]   ;;  %s1707_s3 = inlined_call_operand.vmem [shape: bf16[24,128], index: 3, kind: input, shape index: {}]   ;;  %s1708_s4 = inlined_call_operand.vmem [shape: bf16[128,128], index: 4, kind: input, shape index: {}]   ;;  %s1709_s5 = inlined_call_operand.vmem [shape: f32[8,128], index: 5, kind: input, shape index: {}]   ;;  %s1710_s6 = inlined_call_operand.hbm [shape: f32[1,256], index: 6, kind: output, shape index: {}]  }
   0x1   :  { %13 = vsyncpa [#allocation3 + $0x1], 0  ;;  %s1412_s21 = smov 0   ;;  %s1414_s22 = smov 0  }
   0x2   :  { %s1416_s23 = smov 0   ;;  %s1418_s24 = smov 0  }
   0x3 LB: > { %s1039_s25 = sadd.s32 4294967295, %s1371_s24   ;;  %s1040_s26 = sadd.s32 4294967294, %s1371_s24   ;;  %s1371_s24 = sphi %s1418_s24, %s1716_s24   ;;  %s1367_s23 = sphi %s1416_s23, %s1715_s23   ;;  %s1363_s22 = sphi %s1414_s22, %s1714_s22   ;;  %s1359_s21 = sphi %s1412_s21, %s1713_s21  }
   0x4   : > { %s1435_s27 = sadd.s32 1, %s1371_s24   ;;  %s162_s28 = sadd.s32 1, %s1367_s23 }
   0x5   : > { %s159_s29 = ssub.s32 %s1371_s24, %s1435_s27  ;;  %p172_p0 = scmp.ne.s32.totalorder %s1367_s23, %s1363_s22 }
   0x6   : > { %p160_p1 = scmp.eq.s32.totalorder %s159_s29, 0  ;;  %p173_p2 = scmp.eq.s32.totalorder %s1039_s25, 1 }
   0x7   : > { %p178_p3 = scmp.ne.s32.totalorder %s1363_s22, %s1359_s21  ;;  %p179_p4 = scmp.eq.s32.totalorder %s1040_s26, 1 }
   0x8   : > { %s1445_s30 = scalar_select %p160_p1, %s1367_s23, %s162_s28  }
   0x9   : > { %p1447_p5 = por %p173_p2, %p172_p0  ;;  %p1451_p6 = por %p179_p4, %p178_p3 }
   0xa   : > { %p1043_p7 = scmp.ge.s32.totalorder %s1371_s24, 1  ;;  %p227_p8 = scmp.lt.s32.totalorder %s1371_s24, 3 }
   0xc   : > { %p228_p9 = pnand %p1043_p7, %p227_p8 }
   0xd   : > { %v1293_v0 = vld [vmem:[%s1706_s2] sm:$0xff] (!%p228_p9)   ;;  %vm507_vm0 = vcmask (!%p228_p9), 1043456   ;;  %s1463_s13 = sshll.u32 (!%p228_p9), %s1039_s25, 4  ;;  %v1295_v2 = vld [vmem:[%s1706_s2 + $0x8] sm:$0xff] (!%p228_p9)   ;;  %vm343_vm1 = vcmask (!%p228_p9), 261120   ;;  %vm482_vm2 = vcmask (!%p228_p9), 195584  }
   0xe   : > { %231 = sbr.rel (%p228_p9) target bundleno = 794 (0x31a), region = 44  ;;  %v1294_v1 = vld [vmem:[%s1707_s3] sm:$0xff] (!%p228_p9)   ;;  %1137 = vmatprep.subr.bf16.mxu0 (!%p228_p9), %v1293_v0  ;;  %p262_p10 = scmp.lt.s32.totalorder (!%p228_p9), %s1463_s13, 31  ;;  %v1296_v3 = vld [vmem:[%s1707_s3 + $0x8] ss:$0 sps:$4 sm:$0xff] (!%p228_p9)   ;;  %v1299_v25 = vld [vmem:[%s1708_s4 + $0x10] sm:$0xff] (!%p228_p9)  }
   0xf   : > { %1157 = vmatprep.subr.bf16.mxu1 (!%p228_p9), %v1294_v1  ;;  %1138 = vmatpush3.bf16.msra.mxu0 (!%p228_p9), %v1293_v0  ;;  %v1297_v4 = vld [vmem:[%s1708_s4] sm:$0xff] (!%p228_p9)   ;;  %v509_v5 = vsel (!%p228_p9), %vm507_vm0, %v1296_v3, 0  ;;  %v1298_v13 = vld [vmem:[%s1708_s4 + $0x8] sm:$0xff] (!%p228_p9)   ;;  %v1300_v38 = vld [vmem:[%s1708_s4 + $0x18] sm:$0xff] (!%p228_p9)   ;;  %v1373_v61 = vmov (!%p228_p9), 0.0   ;;  %vm1374_vm3 = vmmov (!%p228_p9), 0   ;;  %s1662_s14 = scalar_lea.hbm (!%p228_p9), %s1710_s6, %s1463_s13 }
  0x10   : > { %1158 = vmatpush3.bf16.msra.mxu1 (!%p228_p9), %v1294_v1  ;;  %1139 = vmatprep.subr.bf16.mxu0 (!%p228_p9), %v1295_v2  ;;  %v1301_v47 = vld [vmem:[%s1708_s4 + $0x20] sm:$0xff] (!%p228_p9)   ;;  %v1302_v52 = vld [vmem:[%s1708_s4 + $0x28] sm:$0xff] (!%p228_p9)   ;;  %v1303_v57 = vld [vmem:[%s1708_s4 + $0x30] sm:$0xff] (!%p228_p9)   ;;  %s259_s9 = sand.u32 (!%p228_p9), 1, %s1363_s22   ;;  %s1376_s17 = smov (!%p228_p9), [#allocation2]  }
  0x11   : > { %1249 = vmatprep.subr.msk.bf16.mxu1 (!%p228_p9), %vm507_vm0, %v1296_v3  ;;  %v1304_v60 = vld [vmem:[%s1708_s4 + $0x38] sm:$0xff] (!%p228_p9)   ;;  %v1560_v62 = vld [vmem:[%s1709_s5] ss:$0 sm:$0xff] (!%p228_p9)  ;;  %v1565_v63 = vld [vmem:[%s1709_s5 + $0x1] ss:$0 sm:$0xff] (!%p228_p9)  ;;  %s961_s15 = scalar_lea.sflag (!%p228_p9), [#allocation3], %s259_s9 }
  0x13   : > { %1140 = vmatpush3.bf16.msra.mxu0 (!%p228_p9), %v1295_v2 }
  0x14   : > { %1160 = vmatpush3.bf16.msra.mxu1 (!%p228_p9), %v509_v5  ;;  %1177 = vmatprep.subr.bf16.mxu0 (!%p228_p9), %v1297_v4 }
  0x15   : > { %s263_s18 = scalar_select %p262_p10, %s1463_s13, 31  ;;  %1209 = vmatprep.subr.bf16.mxu1 %v1373_v61 }
  0x17   : > { %s1045_s25 = sshll.u32 %s263_s18, 3  ;;  %s1313_s18 = sshll.u32 %s1376_s17, 4  ;;  %s1314_s18 = int_to_ptr.vmem [resolvable:$false] %s1313_s18 }
  0x18   : > { %s1479_s29 = scalar_lea.vmem %s1704_s0, %s1045_s25  ;;  %s1484_s11 = scalar_lea.vmem %s1705_s1, %s1045_s25 }
  0x19   : > { %v274_v6 = vld [vmem:[%s1479_s29] sm:$0xff]  ;;  %v275_v7 = vld [vmem:[%s1479_s29 + $0x8] sm:$0xff]  ;;  %v276_v11 = vld [vmem:[%s1479_s29 + $0x10] sm:$0xff]  ;;  %s1315_s19 = scalar_lea.vmem %s1314_s18, 32 }
  0x1a   : > { %v298_v8 = vld [vmem:[%s1484_s11] sm:$0xff]  ;;  %v290_v9 = vpack.c.bf16 %v275_v7, %v274_v6  ;;  %v299_v10 = vld [vmem:[%s1484_s11 + $0x8] sm:$0xff]  ;;  %v277_v12 = vld [vmem:[%s1479_s29 + $0x18] sm:$0xff] }
  0x1b   : > { %v314_v14 = vpack.c.bf16 %v299_v10, %v298_v8  ;;  %v291_v15 = vpack.c.bf16 %v277_v12, %v276_v11  ;;  %v300_v16 = vld [vmem:[%s1484_s11 + $0x10] sm:$0xff]  ;;  %v301_v17 = vld [vmem:[%s1484_s11 + $0x18] sm:$0xff]  ;;  %v278_v18 = vld [vmem:[%s1479_s29 + $0x20] sm:$0xff] }
  0x1c   : > { %1141 = vmatprep.mubr.msk.bf16.mxu0 %vm343_vm1, %v290_v9  ;;  %v315_v19 = vpack.c.bf16 %v301_v17, %v300_v16  ;;  %v279_v20 = vld [vmem:[%s1479_s29 + $0x28] sm:$0xff]  ;;  %v302_v21 = vld [vmem:[%s1484_s11 + $0x20] sm:$0xff]  ;;  %v280_v26 = vld [vmem:[%s1479_s29 + $0x30] sm:$0xff] }
  0x1d   : > { %v303_v22 = vld [vmem:[%s1484_s11 + $0x28] sm:$0xff]  ;;  %1161 = vmatprep.mubr.msk.bf16.mxu1 %vm482_vm2, %v314_v14  ;;  %1142 = vmatmul.mubr.msk.bf16.vlgmr.msra.gmra.mrb[0].mxu0 %vm343_vm1, %v291_v15  ;;  %v292_v23 = vpack.c.bf16 %v279_v20, %v278_v18  ;;  %v281_v27 = vld [vmem:[%s1479_s29 + $0x38] sm:$0xff]  ;;  %v304_v28 = vld [vmem:[%s1484_s11 + $0x30] sm:$0xff] }
  0x1e   : > { %v316_v24 = vpack.c.bf16 %v303_v22, %v302_v21  ;;  %1162 = vmatmul.mubr.msk.bf16.vlgmr.msra.gmra.mrb[0].mxu1 %vm482_vm2, %v315_v19  ;;  %1178 = vmatpush3.bf16.msra.mxu0 %v1297_v4  ;;  %v305_v29 = vld [vmem:[%s1484_s11 + $0x38] sm:$0xff]  ;;  %v282_v30 = vld [vmem:[%s1479_s29 + $0x40] sm:$0xff]  ;;  %v283_v31 = vld [vmem:[%s1479_s29 + $0x48] sm:$0xff]  ;;  %v293_v34 = vpack.c.bf16 %v281_v27, %v280_v26 }
  0x1f   : > { %1145 = vmatprep.mubr.msk.bf16.mxu0 %vm343_vm1, %v292_v23  ;;  %v306_v32 = vld [vmem:[%s1484_s11 + $0x40] sm:$0xff]  ;;  %v307_v33 = vld [vmem:[%s1484_s11 + $0x48] sm:$0xff]  ;;  %1179 = vmatprep.subr.bf16.mxu0 %v1298_v13  ;;  %v317_v35 = vpack.c.bf16 %v305_v29, %v304_v28  ;;  %v294_v36 = vpack.c.bf16 %v283_v31, %v282_v30  ;;  %v284_v39 = vld [vmem:[%s1479_s29 + $0x50] sm:$0xff] }
  0x20   : > { %1165 = vmatprep.mubr.msk.bf16.mxu1 %vm482_vm2, %v316_v24  ;;  %v318_v37 = vpack.c.bf16 %v307_v33, %v306_v32  ;;  %v285_v40 = vld [vmem:[%s1479_s29 + $0x58] sm:$0xff]  ;;  %v308_v41 = vld [vmem:[%s1484_s11 + $0x50] sm:$0xff]  ;;  %v286_v43 = vld [vmem:[%s1479_s29 + $0x60] sm:$0xff] }
  0x21   : > { %v309_v42 = vld [vmem:[%s1484_s11 + $0x58] sm:$0xff]  ;;  %v287_v44 = vld [vmem:[%s1479_s29 + $0x68] sm:$0xff]  ;;  %v310_v45 = vld [vmem:[%s1484_s11 + $0x60] sm:$0xff]  ;;  %v295_v48 = vpack.c.bf16 %v285_v40, %v284_v39 }
  0x22   : > { %1180 = vmatpush3.bf16.msra.mxu0 %v1298_v13  ;;  %v311_v46 = vld [vmem:[%s1484_s11 + $0x68] sm:$0xff]  ;;  %v319_v49 = vpack.c.bf16 %v309_v42, %v308_v41  ;;  %v296_v50 = vpack.c.bf16 %v287_v44, %v286_v43  ;;  %v288_v53 = vld [vmem:[%s1479_s29 + $0x70] sm:$0xff]  ;;  %v289_v54 = vld [vmem:[%s1479_s29 + $0x78] sm:$0xff]  ;;  %s260_s29 = scalar_lea.vmem [#allocation2], %s259_s9 }
  0x23   : > { %1181 = vmatprep.subr.bf16.mxu0 %v1299_v25  ;;  %v320_v51 = vpack.c.bf16 %v311_v46, %v310_v45  ;;  %v312_v55 = vld [vmem:[%s1484_s11 + $0x70] sm:$0xff]  ;;  %v313_v56 = vld [vmem:[%s1484_s11 + $0x78] sm:$0xff]  ;;  %v297_v58 = vpack.c.bf16 %v289_v54, %v288_v53  ;;  %s973_s10 = sshll.u32 %s260_s29, 4  ;;  %s1664_s10 = int_to_ptr.vmem [resolvable:$true] %s973_s10 }
  0x24   : > { %v321_v59 = vpack.c.bf16 %v313_v56, %v312_v55  ;;  %s1309_s16 = scalar_lea.vmem %s1664_s10, 16  ;;  %p1316_p0 = scmp.lt.s32.totalorder %s1664_s10, %s1314_s18 }
  0x25   : > { %1146 = vmatmul.mubr.msk.bf16.gmra.mrb[4].mxu0 %vm343_vm1, %v293_v34  ;;  %p1310_p11 = scmp.ne.s32.totalorder %s1664_s10, %s1309_s16  ;;  %p1317_p1 = scmp.lt.s32.totalorder %s1315_s19, %s1309_s16 }
  0x26   : > { %1166 = vmatmul.mubr.msk.bf16.gmra.mrb[4].mxu1 %vm482_vm2, %v317_v35  ;;  %1149 = vmatprep.mubr.msk.bf16.mxu0 %vm343_vm1, %v294_v36 }
  0x27   : > { %1169 = vmatprep.mubr.msk.bf16.mxu1 %vm482_vm2, %v318_v37  ;;  %1182 = vmatpush3.bf16.msra.mxu0 %v1299_v25  ;;  %p1311_p12 = pnand %p1310_p11, %p1447_p5  ;;  %p1318_p2 = por %p1317_p1, %p1316_p0 }
  0x28   : > { %1183 = vmatprep.subr.bf16.mxu0 %v1300_v38 }
  0x29   : > { %p1312_p13 = pneg %p1311_p12 }
  0x2b   : > { %1184 = vmatpush3.bf16.msra.mxu0 %v1300_v38  ;;  %p1319_p3 = pnand %p1318_p2, %p1312_p13 }
  0x2c   : > { %1185 = vmatprep.subr.bf16.mxu0 %v1301_v47 }
  0x2d   : > { %1150 = vmatmul.mubr.msk.bf16.gmra.mrb[8].mxu0 %vm343_vm1, %v295_v48 }
  0x2e   : > { %1170 = vmatmul.mubr.msk.bf16.gmra.mrb[8].mxu1 %vm482_vm2, %v319_v49  ;;  %1153 = vmatprep.mubr.msk.bf16.mxu0 %vm343_vm1, %v296_v50 }
  0x2f   : > { %1173 = vmatprep.mubr.msk.bf16.mxu1 %vm482_vm2, %v320_v51  ;;  %1186 = vmatpush3.bf16.msra.mxu0 %v1301_v47 }
  0x30   : > { %1187 = vmatprep.subr.bf16.mxu0 %v1302_v52 }
  0x33   : > { %1188 = vmatpush3.bf16.msra.mxu0 %v1302_v52 }
  0x34   : > { %1189 = vmatprep.subr.bf16.mxu0 %v1303_v57 }
  0x35   : > { %1154 = vmatmul.mubr.msk.bf16.gmra.mrb[12].mxu0 %vm343_vm1, %v297_v58 }
  0x36   : > { %1174 = vmatmul.mubr.msk.bf16.gmra.mrb[12].mxu1 %vm482_vm2, %v321_v59 }
  0x37   : > { %1190 = vmatpush3.bf16.msra.mxu0 %v1303_v57  ;;  %1225 = vmatprep.mubr.msk.bf16.mxu1 %vm1374_vm3, %v1373_v61 }
  0x38   : > { %1191 = vmatprep.subr.bf16.mxu0 %v1304_v60 }
  0x3b   : > { %1192 = vmatpush3.bf16.msra.mxu0 %v1304_v60 }
  0x3c   : > { %1229 = vmatprep.subr.bf16.mxu0 %v1373_v61 }
  0xf0   : > { %v1143_v0 = vpop.f32.mrb[0].mxu0 }
  0xf1   : > { %v411_v1 = vadd.f32 %v1143_v0, %v1560_v62  ;;  %v1163_v2 = vpop.f32.mrb[0].mxu1  ;;  %v402_v3 = vpop.f32.mrb[1].mxu0 }
  0xf2   : > { %v554_v4 = vadd.f32 %v1163_v2, %v1565_v63  ;;  %v403_v5 = vadd.f32 %v1560_v62, %v402_v3  ;;  %v545_v6 = vpop.f32.mrb[1].mxu1  ;;  %v1144_v7 = vpop.f32.mrb[2].mxu0 }
  0xf3   : > { %v546_v8 = vadd.f32 %v1565_v63, %v545_v6  ;;  %v414_v9 = vadd.f32 %v1144_v7, %v1560_v62  ;;  %v1164_v10 = vpop.f32.mrb[2].mxu1  ;;  %v405_v11 = vpop.f32.mrb[3].mxu0 }
  0xf4   : > { %v1572_v12 = vmul.f32 %v554_v4, %v411_v1  ;;  %v636_v13 = vadd.f32 %v554_v4, %v411_v1  ;;  %v557_v14 = vadd.f32 %v1164_v10, %v1565_v63  ;;  %v406_v15 = vadd.f32 %v1560_v62, %v405_v11  ;;  %v548_v16 = vpop.f32.mrb[3].mxu1 }
  0xf5   : > { %v608_v17 = vmul.f32 %v546_v8, %v403_v5  ;;  %v634_v18 = vadd.f32 %v546_v8, %v403_v5  ;;  %v549_v19 = vadd.f32 %v1565_v63, %v548_v16 }
  0xf6   : > { %v1577_v20 = vmul.f32 %v557_v14, %v414_v9  ;;  %v637_v21 = vadd.f32 %v557_v14, %v414_v9  ;;  %v652_v24 = vmax.f32 %v636_v13, 0.0 }
  0xf7   : > { %v609_v22 = vmul.f32 %v549_v19, %v406_v15  ;;  %v635_v23 = vadd.f32 %v549_v19, %v406_v15  ;;  %v650_v28 = vmax.f32 %v634_v18, 0.0 }
  0xf8   : > { %v625_v25 = vpack.c.bf16 %v1577_v20, %v1572_v12  ;;  %v653_v26 = vmax.f32 %v637_v21, 0.0  ;;  %v1147_v27 = vpop.f32.mrb[4].mxu0 }
  0xf9   : > { %v624_v29 = vpack.c.bf16 %v609_v22, %v608_v17  ;;  %v651_v30 = vmax.f32 %v635_v23, 0.0  ;;  %v427_v31 = vadd.f32 %v1147_v27, %v1560_v62  ;;  %v1167_v32 = vpop.f32.mrb[4].mxu1  ;;  %v418_v33 = vpop.f32.mrb[5].mxu0 }
  0xfa   : > { %v667_v34 = vpack.c.bf16 %v653_v26, %v652_v24  ;;  %v570_v35 = vadd.f32 %v1167_v32, %v1565_v63  ;;  %v419_v36 = vadd.f32 %v1560_v62, %v418_v33  ;;  %v561_v37 = vpop.f32.mrb[5].mxu1  ;;  %v1148_v38 = vpop.f32.mrb[6].mxu0 }
  0xfb   : > { %v562_v39 = vadd.f32 %v1565_v63, %v561_v37  ;;  %v430_v40 = vadd.f32 %v1148_v38, %v1560_v62  ;;  %v1168_v41 = vpop.f32.mrb[6].mxu1  ;;  %v421_v42 = vpop.f32.mrb[7].mxu0  ;;  %v666_v43 = vpack.c.bf16 %v651_v30, %v650_v28 }
  0xfc   : > { %v1586_v44 = vmul.f32 %v570_v35, %v427_v31  ;;  %v640_v45 = vadd.f32 %v570_v35, %v427_v31  ;;  %v573_v46 = vadd.f32 %v1168_v41, %v1565_v63  ;;  %v422_v47 = vadd.f32 %v1560_v62, %v421_v42  ;;  %v564_v48 = vpop.f32.mrb[7].mxu1 }
  0xfd   : > { %v1590_v49 = vmul.f32 %v562_v39, %v419_v36  ;;  %v638_v50 = vadd.f32 %v562_v39, %v419_v36  ;;  %v565_v51 = vadd.f32 %v1565_v63, %v564_v48  ;;  %1193 = vmatprep.mubr.bf16.mxu0 %v666_v43 }
  0xfe   : > { %v656_v52 = vmax.f32 %v640_v45, 0.0  ;;  %v1593_v53 = vmul.f32 %v573_v46, %v430_v40  ;;  %v641_v54 = vadd.f32 %v573_v46, %v430_v40  ;;  %1194 = vmatmul.mubr.bf16.vlgmr.msra.gmra.mrb[16].mxu0 %v667_v34 }
  0xff   : > { %v654_v55 = vmax.f32 %v638_v50, 0.0  ;;  %v1595_v56 = vmul.f32 %v565_v51, %v422_v47  ;;  %v639_v57 = vadd.f32 %v565_v51, %v422_v47  ;;  %1230 = vmatpush3.bf16.xpose.msra.mxu0 %v624_v29 }
 0x100   : > { %v627_v58 = vpack.c.bf16 %v1593_v53, %v1586_v44  ;;  %v657_v59 = vmax.f32 %v641_v54, 0.0  ;;  %1231 = vmatprep.subr.bf16.mxu0 %v1373_v61  ;;  %v1151_v60 = vpop.f32.mrb[8].mxu0  ;;  %v1375_v53 = vmov 0  }
 0x101   : > { %v626_v0 = vpack.c.bf16 %v1595_v56, %v1590_v49  ;;  %v655_v1 = vmax.f32 %v639_v57, 0.0  ;;  %v443_v2 = vadd.f32 %v1151_v60, %v1560_v62  ;;  %v1171_v3 = vpop.f32.mrb[8].mxu1  ;;  %v434_v4 = vpop.f32.mrb[9].mxu0  ;;  %v946_v49 = vld [vmem:[%s1709_s5 + $0x5] sm:$0x1]  ;;  %1292 = vset.pattern.permute.xlu0 %v1375_v53 }
 0x102   : > { %v669_v5 = vpack.c.bf16 %v657_v59, %v656_v52  ;;  %v586_v6 = vadd.f32 %v1171_v3, %v1565_v63  ;;  %v435_v7 = vadd.f32 %v1560_v62, %v434_v4  ;;  %v577_v8 = vpop.f32.mrb[9].mxu1  ;;  %v1152_v9 = vpop.f32.mrb[10].mxu0  ;;  %949 = vperm.xlu0 %1292, %v946_v49   ;;  %v1070_v56 = vld [vmem:[%s1709_s5 + $0x2] ss:$0 sm:$0xff] }
 0x103   : > { %v668_v10 = vpack.c.bf16 %v655_v1, %v654_v55  ;;  %v578_v11 = vadd.f32 %v1565_v63, %v577_v8  ;;  %v446_v13 = vadd.f32 %v1152_v9, %v1560_v62  ;;  %v1172_v14 = vpop.f32.mrb[10].mxu1  ;;  %v437_v15 = vpop.f32.mrb[11].mxu0 }
 0x104   : > { %v1607_v16 = vmul.f32 %v586_v6, %v443_v2  ;;  %v644_v17 = vadd.f32 %v586_v6, %v443_v2  ;;  %v589_v18 = vadd.f32 %v1172_v14, %v1565_v63  ;;  %v438_v19 = vadd.f32 %v1560_v62, %v437_v15  ;;  %v580_v21 = vpop.f32.mrb[11].mxu1 }
 0x105   : > { %1197 = vmatprep.mubr.bf16.mxu0 %v668_v10  ;;  %v616_v22 = vmul.f32 %v578_v11, %v435_v7  ;;  %v642_v23 = vadd.f32 %v578_v11, %v435_v7  ;;  %v581_v24 = vadd.f32 %v1565_v63, %v580_v21 }
 0x106   : > { %1198 = vmatmul.mubr.bf16.gmra.mrb[20].mxu0 %v669_v5  ;;  %v660_v26 = vmax.f32 %v644_v17, 0.0  ;;  %v619_v27 = vmul.f32 %v589_v18, %v446_v13  ;;  %v645_v28 = vadd.f32 %v589_v18, %v446_v13 }
 0x107   : > { %1232 = vmatpush3.bf16.xpose.msra.mxu0 %v625_v25  ;;  %v658_v29 = vmax.f32 %v642_v23, 0.0  ;;  %v617_v30 = vmul.f32 %v581_v24, %v438_v19  ;;  %v643_v31 = vadd.f32 %v581_v24, %v438_v19 }
 0x108   : > { %v629_v32 = vpack.c.bf16 %v619_v27, %v1607_v16  ;;  %v661_v33 = vmax.f32 %v645_v28, 0.0  ;;  %1233 = vmatprep.subr.bf16.mxu0 %v1373_v61  ;;  %v1155_v34 = vpop.f32.mrb[12].mxu0 }
 0x109   : > { %v628_v35 = vpack.c.bf16 %v617_v30, %v616_v22  ;;  %v659_v36 = vmax.f32 %v643_v31, 0.0  ;;  %v459_v37 = vadd.f32 %v1155_v34, %v1560_v62  ;;  %v1175_v38 = vpop.f32.mrb[12].mxu1  ;;  %v450_v39 = vpop.f32.mrb[13].mxu0 }
 0x10a   : > { %v671_v40 = vpack.c.bf16 %v661_v33, %v660_v26  ;;  %v602_v41 = vadd.f32 %v1175_v38, %v1565_v63  ;;  %v451_v12 = vadd.f32 %v1560_v62, %v450_v39  ;;  %v593_v20 = vpop.f32.mrb[13].mxu1  ;;  %v1156_v25 = vpop.f32.mrb[14].mxu0 }
 0x10b   : > { %v670_v42 = vpack.c.bf16 %v659_v36, %v658_v29  ;;  %v594_v43 = vadd.f32 %v1565_v63, %v593_v20  ;;  %v462_v45 = vadd.f32 %v1156_v25, %v1560_v62  ;;  %v1176_v46 = vpop.f32.mrb[14].mxu1  ;;  %v453_v47 = vpop.f32.mrb[15].mxu0 }
 0x10c   : > { %v622_v48 = vmul.f32 %v602_v41, %v459_v37  ;;  %v648_v50 = vadd.f32 %v602_v41, %v459_v37  ;;  %v605_v51 = vadd.f32 %v1176_v46, %v1565_v63  ;;  %v454_v52 = vadd.f32 %v1560_v62, %v453_v47  ;;  %v596_v54 = vpop.f32.mrb[15].mxu1 }
 0x10d   : > { %1201 = vmatprep.mubr.bf16.mxu0 %v670_v42  ;;  %v620_v55 = vmul.f32 %v594_v43, %v451_v12  ;;  %v646_v57 = vadd.f32 %v594_v43, %v451_v12  ;;  %v597_v59 = vadd.f32 %v1565_v63, %v596_v54  ;;  %v632_v63 = vld [vmem:[%s1709_s5 + $0x3] sm:$0x1] }
 0x10e   : > { %1202 = vmatmul.mubr.bf16.gmra.mrb[24].mxu0 %v671_v40  ;;  %v664_v60 = vmax.f32 %v648_v50, 0.0  ;;  %v623_v1 = vmul.f32 %v605_v51, %v462_v45  ;;  %v649_v2 = vadd.f32 %v605_v51, %v462_v45  ;;  %v633_v44 = vpack.c.bf16 %v632_v63, %v632_v63 }
 0x10f   : > { %1234 = vmatpush3.bf16.xpose.msra.mxu0 %v626_v0  ;;  %v662_v3 = vmax.f32 %v646_v57, 0.0  ;;  %v621_v4 = vmul.f32 %v597_v59, %v454_v52  ;;  %v647_v5 = vadd.f32 %v597_v59, %v454_v52 }
 0x110   : > { %1235 = vmatprep.subr.bf16.mxu0 %v1373_v61  ;;  %v631_v62 = vpack.c.bf16 %v623_v1, %v622_v48  ;;  %v665_v6 = vmax.f32 %v649_v2, 0.0 }
 0x111   : > { %v630_v7 = vpack.c.bf16 %v621_v4, %v620_v55  ;;  %v663_v8 = vmax.f32 %v647_v5, 0.0 }
 0x112   : > { %v673_v9 = vpack.c.bf16 %v665_v6, %v664_v60 }
 0x113   : > { %v672_v10 = vpack.c.bf16 %v663_v8, %v662_v3 }
 0x115   : > { %1205 = vmatprep.mubr.bf16.mxu0 %v672_v10 }
 0x116   : > { %1206 = vmatmul.mubr.bf16.gmra.mrb[28].mxu0 %v673_v9  ;;  %v856_v9 = vld [vmem:[%s1709_s5 + $0x4] sm:$0x1] }
 0x117   : > { %1236 = vmatpush3.bf16.xpose.msra.mxu0 %v627_v58  ;;  %1245 = vmatprep.mubr.msk.bf16.mxu0 %vm1374_vm3, %v1373_v61  ;;  %v857_v10 = vpack.c.bf16 %v856_v9, %v856_v9 }
 0x118   : > { %1237 = vmatprep.subr.bf16.mxu0 %v1373_v61 }
 0x11f   : > { %1238 = vmatpush3.bf16.xpose.msra.mxu0 %v628_v35 }
 0x120   : > { %1239 = vmatprep.subr.bf16.mxu0 %v1373_v61 }
 0x127   : > { %1240 = vmatpush3.bf16.xpose.msra.mxu0 %v629_v32 }
 0x128   : > { %1241 = vmatprep.subr.bf16.mxu0 %v1373_v61 }
 0x12f   : > { %1242 = vmatpush3.bf16.xpose.msra.mxu0 %v630_v7 }
 0x130   : > { %1243 = vmatprep.subr.bf16.mxu0 %v1373_v61 }
 0x137   : > { %1244 = vmatpush3.bf16.xpose.msra.mxu0 %v631_v62 }
 0x13e   : > { %1246 = vmatmul.mubr.bf16.vlgmr.msra.gmra.mrb[32].mxu0 %v633_v44 }
 0x1d1   : > { %v1195_v58 = vpop.f32.mrb[16].mxu0 }
 0x1d2   : > { %v786_v0 = vadd.f32 %v1195_v58, %v1070_v56  ;;  %v777_v11 = vpop.f32.mrb[17].mxu0  ;;  %v950_v58 = vpop.permute.xlu0 %949 }
 0x1d3   : > { %v778_v13 = vadd.f32 %v1070_v56, %v777_v11  ;;  %v1196_v14 = vpop.f32.mrb[18].mxu0 }
 0x1d4   : > { %v789_v15 = vadd.f32 %v1196_v14, %v1070_v56  ;;  %v780_v16 = vpop.f32.mrb[19].mxu0  ;;  %v842_v18 = vmax.f32 %v786_v0, 0.0 }
 0x1d5   : > { %v781_v17 = vadd.f32 %v1070_v56, %v780_v16  ;;  %v840_v21 = vmax.f32 %v778_v13, 0.0 }
 0x1d6   : > { %v843_v19 = vmax.f32 %v789_v15, 0.0 }
 0x1d7   : > { %v841_v22 = vmax.f32 %v781_v17, 0.0 }
 0x1d8   : > { %v859_v23 = vpack.c.bf16 %v843_v19, %v842_v18 }
 0x1d9   : > { %v858_v24 = vpack.c.bf16 %v841_v22, %v840_v21  ;;  %v1199_v26 = vpop.f32.mrb[20].mxu0 }
 0x1da   : > { %v802_v27 = vadd.f32 %v1199_v26, %v1070_v56  ;;  %v793_v28 = vpop.f32.mrb[21].mxu0 }
 0x1db   : > { %v794_v29 = vadd.f32 %v1070_v56, %v793_v28  ;;  %1210 = vmatpush3.bf16.xpose.msra.mxu1 %v858_v24  ;;  %v1200_v30 = vpop.f32.mrb[22].mxu0 }
 0x1dc   : > { %v846_v31 = vmax.f32 %v802_v27, 0.0  ;;  %v805_v32 = vadd.f32 %v1200_v30, %v1070_v56  ;;  %v796_v33 = vpop.f32.mrb[23].mxu0  ;;  %1211 = vmatprep.subr.bf16.mxu1 %v1373_v61 }
 0x1dd   : > { %v844_v34 = vmax.f32 %v794_v29, 0.0  ;;  %v797_v35 = vadd.f32 %v1070_v56, %v796_v33 }
 0x1de   : > { %v847_v36 = vmax.f32 %v805_v32, 0.0 }
 0x1df   : > { %v845_v37 = vmax.f32 %v797_v35, 0.0 }
 0x1e0   : > { %v861_v38 = vpack.c.bf16 %v847_v36, %v846_v31 }
 0x1e1   : > { %v860_v39 = vpack.c.bf16 %v845_v37, %v844_v34  ;;  %v1203_v40 = vpop.f32.mrb[24].mxu0 }
 0x1e2   : > { %v818_v41 = vadd.f32 %v1203_v40, %v1070_v56  ;;  %v809_v12 = vpop.f32.mrb[25].mxu0 }
 0x1e3   : > { %1212 = vmatpush3.bf16.xpose.msra.mxu1 %v859_v23  ;;  %v810_v20 = vadd.f32 %v1070_v56, %v809_v12  ;;  %v1204_v25 = vpop.f32.mrb[26].mxu0 }
 0x1e4   : > { %v850_v42 = vmax.f32 %v818_v41, 0.0  ;;  %1213 = vmatprep.subr.bf16.mxu1 %v1373_v61  ;;  %v821_v43 = vadd.f32 %v1204_v25, %v1070_v56  ;;  %v812_v45 = vpop.f32.mrb[27].mxu0 }
 0x1e5   : > { %v848_v46 = vmax.f32 %v810_v20, 0.0  ;;  %v813_v47 = vadd.f32 %v1070_v56, %v812_v45 }
 0x1e6   : > { %v851_v48 = vmax.f32 %v821_v43, 0.0 }
 0x1e7   : > { %v849_v50 = vmax.f32 %v813_v47, 0.0 }
 0x1e8   : > { %v863_v51 = vpack.c.bf16 %v851_v48, %v850_v42 }
 0x1e9   : > { %v862_v52 = vpack.c.bf16 %v849_v50, %v848_v46  ;;  %v1207_v54 = vpop.f32.mrb[28].mxu0 }
 0x1ea   : > { %v834_v55 = vadd.f32 %v1207_v54, %v1070_v56  ;;  %v825_v57 = vpop.f32.mrb[29].mxu0 }
 0x1eb   : > { %1214 = vmatpush3.bf16.xpose.msra.mxu1 %v860_v39  ;;  %v826_v59 = vadd.f32 %v1070_v56, %v825_v57  ;;  %v1208_v60 = vpop.f32.mrb[30].mxu0 }
 0x1ec   : > { %1215 = vmatprep.subr.bf16.mxu1 %v1373_v61  ;;  %v854_v1 = vmax.f32 %v834_v55, 0.0  ;;  %v837_v2 = vadd.f32 %v1208_v60, %v1070_v56  ;;  %v828_v3 = vpop.f32.mrb[31].mxu0 }
 0x1ed   : > { %v852_v4 = vmax.f32 %v826_v59, 0.0  ;;  %v829_v5 = vadd.f32 %v1070_v56, %v828_v3 }
 0x1ee   : > { %v855_v62 = vmax.f32 %v837_v2, 0.0 }
 0x1ef   : > { %v853_v6 = vmax.f32 %v829_v5, 0.0 }
 0x1f0   : > { %v865_v7 = vpack.c.bf16 %v855_v62, %v854_v1 }
 0x1f1   : > { %v864_v8 = vpack.c.bf16 %v853_v6, %v852_v4 }
 0x1f3   : > { %1216 = vmatpush3.bf16.xpose.msra.mxu1 %v861_v38 }
 0x1f4   : > { %1217 = vmatprep.subr.bf16.mxu1 %v1373_v61 }
 0x1fb   : > { %1218 = vmatpush3.bf16.xpose.msra.mxu1 %v862_v52 }
 0x1fc   : > { %1219 = vmatprep.subr.bf16.mxu1 %v1373_v61 }
 0x203   : > { %1220 = vmatpush3.bf16.xpose.msra.mxu1 %v863_v51 }
 0x204   : > { %1221 = vmatprep.subr.bf16.mxu1 %v1373_v61 }
 0x20b   : > { %1222 = vmatpush3.bf16.xpose.msra.mxu1 %v864_v8 }
 0x20c   : > { %1223 = vmatprep.subr.bf16.mxu1 %v1373_v61 }
 0x211   : > { %v940_v63 = vpop.f32.mrb[32].mxu0 }
 0x212   : > { %v1247_v44 = vpop.f32.mrb[33].mxu0 }
 0x213   : > { %1224 = vmatpush3.bf16.xpose.msra.mxu1 %v865_v7  ;;  %v943_v49 = vpop.f32.mrb[34].mxu0 }
 0x214   : > { %v1248_v53 = vpop.f32.mrb[35].mxu0 }
 0x21a   : > { %1226 = vmatmul.mubr.bf16.vlgmr.msra.gmra.mrb[16].mxu1 %v857_v10 }
 0x2ed   : > { %v900_v56 = vpop.f32.mrb[16].mxu1 }
 0x2ee   : > { %v941_v0 = vadd.f32 %v940_v63, %v900_v56  ;;  %v1227_v11 = vpop.f32.mrb[17].mxu1 }
 0x2ef   : > { %v903_v13 = vpop.f32.mrb[18].mxu1 }
 0x2f0   : > { %v952_v14 = vadd.f32 %v950_v58, %v941_v0  ;;  %v1228_v61 = vpop.f32.mrb[19].mxu1 }
 0x2f2   : > { %v1079_v15 = vmul.f32 -1.442695, %v952_v14 }
 0x2f4   : > { %1305 = vpow2.f32 %v1079_v15 }
 0x2fe   : > { %v1306_v16 = vpop.eup %1305 }
 0x2ff   : > { %v956_v17 = vadd.f32 1.0, %v1306_v16 }
 0x301   : > { %1307 = vrcp.f32 %v956_v17 }
 0x30b   : > { %v1308_v18 = vpop.eup %1307 }
 0x30c   : > { %959 = vst [vmem:[%s260_s29] sm:$0x1] %v1308_v18 }
 0x30d   : > { %1322 = shalt.err (!%p1319_p3)
}
 0x30e   : > { %s1323_s13 = scalar_lea.hbm %s1662_s14, 16  ;;  %s1327_s26 = scalar_lea.hbm %s1710_s6, 32 }
 0x30f   : > { %p1324_p4 = scmp.ne.s32.totalorder %s1662_s14, %s1323_s13  ;;  %p1328_p9 = scmp.lt.u32.totalorder %s1662_s14, %s1710_s6 }
 0x310   : > { %p1329_p10 = scmp.lt.u32.totalorder %s1327_s26, %s1323_s13  ;;  %p1331_p12 = scmp.lt.u32.totalorder %s1323_s13, %s1662_s14 }
 0x311   : > { %p1325_p7 = pnand %p1324_p4, %p1447_p5 }
 0x312   : > { %p1330_p11 = por %p1329_p10, %p1328_p9 }
 0x313   : > { %p1326_p8 = pneg %p1325_p7 }
 0x314   : > { %p1332_p13 = por %p1331_p12, %p1330_p11 }
 0x316   : > { %p1333_p0 = pnand %p1332_p13, %p1326_p8 }
 0x318   : > { %1336 = shalt.err (!%p1333_p0)
}
 0x319   : > { %1250 = dma.vmem_to_hbm [thread:$0]  (%p1447_p5), %s1664_s10, 16, %s1662_s14, %s961_s15  }
 0x31a PF: > { %p1256_p1 = scmp.ge.s32.totalorder %s1371_s24, 2  ;;  %s985_s29 = sand.u32 1, %s1359_s21  }
 0x31b   : > { %s986_s11 = scalar_lea.sflag [#allocation3], %s985_s29 }
 0x31c   : > { %p1253_p2 = pnand %p1256_p1, %p1451_p6 }
 0x31e   : > { %1354 = dma.done.wait (!%p1253_p2), %s986_s11, 16  }
 0x31f   : > { %1356 = vsyncadd (!%p1253_p2), %s986_s11, 4294967280  ;;  %p16_p3 = scmp.ge.s32.totalorder %s1435_s27, 4   ;;  %s1713_s21 = smov %s1363_s22 }
 0x320   : > { %s1714_s22 = smov %s1367_s23  ;;  %s1715_s23 = smov %s1445_s30 }
 0x321   : > { %s1716_s24 = smov %s1435_s27  ;;  %18 = sbr.rel (!%p16_p3) target bundleno = 3 (0x3), region = 82 }
 0x328   :  { %990 = vsyncpa [#allocation3], 1 }
 0x329   :  { %992 = vsyncpa [#allocation3 + $0x1], 1 }

</bundles_post_ra>
